<compile_context>
chip_gen: v7x
topology: tpu7x:2x2x1
jax: 0.10.0
libtpu: 0.0.40
codegen_flags: <defaults>
</compile_context>

<pallas_src>
import jax
import jax.numpy as jnp
from jax.experimental import pallas as pl
from jax.experimental.pallas import tpu as pltpu

_IN_FEATURES = 1024
_HIDDEN = 512
_OUT_FEATURES = 3
_OUT_PAD = 128  # lane-dense padded logits width


def _mlp_kernel(x_ref, w1_ref, b1_ref, w2_ref, b2_ref, o_ref):
    # Cast x to bf16 *inside* the kernel: free VPU filler under the MXU/DMA
    # critical path, and avoids a separate XLA cast pass over HBM.
    x_bf = x_ref[...].astype(jnp.bfloat16)
    # GEMM1 on the MXU (bf16 inputs, f32 accumulation), bias + ReLU on the VPU.
    h = jnp.dot(x_bf, w1_ref[...], preferred_element_type=jnp.float32)
    h = jnp.maximum(h + b1_ref[...], 0.0)            # (TM,512) + (1,512) broadcast
    # GEMM2: only 3 real output columns, padded to 128 lanes -> unmasked stores.
    out = jnp.dot(h.astype(jnp.bfloat16), w2_ref[...],
                  preferred_element_type=jnp.float32)
    o_ref[...] = (out + b2_ref[...]).astype(o_ref.dtype)


def _round_up(n, m):
    return ((n + m - 1) // m) * m


def classifier_forward(x, w1, b1, w2, b2, *, tm_max=1024):
    """Forward pass of `Classifier`.

    x : (B, ...) with prod(...) == 1024  (e.g. (B, 4, 16, 16)); f32 or bf16.
    w1: (1024, 512)   b1: (1, 512) or (512,)
    w2: (512, 3)      b2: (1, 3)  or (3,)
    Returns (B, 3) float32 logits.
    """
    B = x.shape[0]
    x_flat = x.reshape(B, -1)                         # same semantics as torch .view(B, -1)
    assert x_flat.shape[1] == _IN_FEATURES, "Classifier expects 1024 flattened features"

    # Tiny one-time casts / padding for the resident weights.
    w1_bf = w1.astype(jnp.bfloat16)
    b1_f = b1.reshape(1, _HIDDEN).astype(jnp.float32)
    w2_pad = jnp.zeros((_HIDDEN, _OUT_PAD), jnp.bfloat16)
    w2_pad = w2_pad.at[:, :_OUT_FEATURES].set(
        w2.reshape(_HIDDEN, _OUT_FEATURES).astype(jnp.bfloat16))
    b2_pad = jnp.zeros((1, _OUT_PAD), jnp.float32)
    b2_pad = b2_pad.at[:, :_OUT_FEATURES].set(
        b2.reshape(1, _OUT_FEATURES).astype(jnp.float32))

    # Batch tiling:
    #   B <= 256 : one full-batch block (block dims == array dims is always legal).
    #   B  > 256 : >= 2 grid steps (so v7x shards the parallel axis across both
    #              TensorCores), tiles rounded to 256 rows, capped at tm_max
    #              to amortize the ~0.35 us per-step overhead within VMEM.
    if B <= 256:
        tm = B
    else:
        tm = min(tm_max, _round_up(pl.cdiv(B, 2), 256))
    grid = (pl.cdiv(B, tm),)

    out_pad = pl.pallas_call(
        _mlp_kernel,
        out_shape=jax.ShapeDtypeStruct((B, _OUT_PAD), jnp.float32),
        grid_spec=pltpu.PrefetchScalarGridSpec(
            num_scalar_prefetch=0,
            grid=grid,
            in_specs=[
                # x: streamed per batch tile in its native dtype (cast in-kernel).
                pl.BlockSpec((tm, _IN_FEATURES), lambda i: (i, 0)),
                # Weights / biases: constant index_map -> fetched once, resident.
                pl.BlockSpec((_IN_FEATURES, _HIDDEN), lambda i: (0, 0)),
                pl.BlockSpec((1, _HIDDEN), lambda i: (0, 0)),
                pl.BlockSpec((_HIDDEN, _OUT_PAD), lambda i: (0, 0)),
                pl.BlockSpec((1, _OUT_PAD), lambda i: (0, 0)),
            ],
            out_specs=pl.BlockSpec((tm, _OUT_PAD), lambda i: (i, 0)),
        ),
        compiler_params=pltpu.CompilerParams(
            # Independent batch tiles -> shardable across v7x's 2 TensorCores.
            dimension_semantics=("parallel",),
            # TM=1024 with a double-buffered f32 x tile needs ~16 MiB scoped
            # VMEM; raise above v5e's 16 MiB default, still well under every
            # generation's physical VMEM.
            vmem_limit_bytes=32 * 1024 * 1024,
        ),
    )(x_flat, w1_bf, b1_f, w2_pad, b2_pad)

    return out_pad[:, :_OUT_FEATURES]


def init_params(key):
    """Deterministic init mirroring nn.Linear's Kaiming-uniform-ish bounds."""
    k1, k2, k3, k4 = jax.random.split(key, 4)
    bound1 = 1.0 / jnp.sqrt(1024.0)
    bound2 = 1.0 / jnp.sqrt(512.0)
    w1 = jax.random.uniform(k1, (1024, 512), jnp.float32, -bound1, bound1)
    b1 = jax.random.uniform(k2, (1, 512), jnp.float32, -bound1, bound1)
    w2 = jax.random.uniform(k3, (512, 3), jnp.float32, -bound2, bound2)
    b2 = jax.random.uniform(k4, (1, 3), jnp.float32, -bound2, bound2)
    return w1, b1, w2, b2


def _reference(x_flat, w1, b1, w2, b2):
    """Pure-JAX reference with the same bf16 rounding of matmul operands."""
    xb = x_flat.astype(jnp.bfloat16).astype(jnp.float32)
    w1b = w1.astype(jnp.bfloat16).astype(jnp.float32)
    w2b = w2.astype(jnp.bfloat16).astype(jnp.float32)
    h = jnp.maximum(xb @ w1b + b1.reshape(1, -1), 0.0)
    hb = h.astype(jnp.bfloat16).astype(jnp.float32)
    return hb @ w2b + b2.reshape(1, -1)


if __name__ == "__main__":
    key = jax.random.PRNGKey(0)
    kx, kp, kx2 = jax.random.split(key, 3)

    w1, b1, w2, b2 = init_params(kp)

    # Small input consistent with the 1024-feature flatten: (B=2, C=4, H=16, W=16).
    x = jax.random.normal(kx, (2, 4, 16, 16), jnp.float32)
    out = jax.block_until_ready(classifier_forward(x, w1, b1, w2, b2))
    ref = _reference(x.reshape(2, -1), w1, b1, w2, b2)
    assert out.shape == (2, 3)
    assert jnp.allclose(out, ref, atol=5e-2, rtol=5e-2)

    # Larger batch to exercise the multi-step tiled path (B=512 -> tm=256, grid=(2,)).
    x_big = jax.random.normal(kx2, (512, 4, 16, 16), jnp.float32)
    out_big = jax.block_until_ready(classifier_forward(x_big, w1, b1, w2, b2))
    ref_big = _reference(x_big.reshape(512, -1), w1, b1, w2, b2)
    assert out_big.shape == (512, 3)
    assert jnp.allclose(out_big, ref_big, atol=5e-2, rtol=5e-2)

    print("KERNEL_OK")
</pallas_src>

<mosaic_0001>
module attributes {stable_mosaic.version = 11 : i64} {
  func.func @_mlp_kernel(%arg0: i32, %arg1: memref<2x1024xf32, #tpu.memory_space<vmem>>, %arg2: memref<1024x512xbf16, #tpu.memory_space<vmem>>, %arg3: memref<1x512xf32, #tpu.memory_space<vmem>>, %arg4: memref<512x128xbf16, #tpu.memory_space<vmem>>, %arg5: memref<1x128xf32, #tpu.memory_space<vmem>>, %arg6: memref<2x128xf32, #tpu.memory_space<vmem>>) attributes {dimension_semantics = [#tpu.dimension_semantics<parallel>], iteration_bounds = array<i64: 1>, scalar_prefetch = 0 : i64, scratch_operands = 0 : i64, tpu.core_type = #tpu.core_type<tc>, window_params = [{transform_indices = @transform_0, window_bounds = array<i64: 2, 1024>}, {pipeline_mode = #tpu.pipeline_mode<synchronous>, transform_indices = @transform_1, window_bounds = array<i64: 1024, 512>}, {pipeline_mode = #tpu.pipeline_mode<synchronous>, transform_indices = @transform_2, window_bounds = array<i64: 1, 512>}, {pipeline_mode = #tpu.pipeline_mode<synchronous>, transform_indices = @transform_3, window_bounds = array<i64: 512, 128>}, {pipeline_mode = #tpu.pipeline_mode<synchronous>, transform_indices = @transform_4, window_bounds = array<i64: 1, 128>}, {transform_indices = @transform_5, window_bounds = array<i64: 2, 128>}]} {
    %c0 = arith.constant 0 : index
    %c0_0 = arith.constant 0 : index
    %0 = vector.load %arg1[%c0, %c0_0] : memref<2x1024xf32, #tpu.memory_space<vmem>>, vector<2x1024xf32>
    %1 = arith.truncf %0 : vector<2x1024xf32> to vector<2x1024xbf16>
    %c0_1 = arith.constant 0 : index
    %c0_2 = arith.constant 0 : index
    %2 = vector.load %arg2[%c0_1, %c0_2] : memref<1024x512xbf16, #tpu.memory_space<vmem>>, vector<1024x512xbf16>
    %cst = arith.constant dense<0.000000e+00> : vector<2x512xf32>
    %3 = tpu.matmul %1, %2, %cst {dimension_numbers = #tpu.dot_dimension_numbers<[1], [0], [0], [1], [0, 0, 1, 1], [], []>} : vector<2x1024xbf16>, vector<1024x512xbf16>, vector<2x512xf32> -> vector<2x512xf32>
    %c0_3 = arith.constant 0 : index
    %c0_4 = arith.constant 0 : index
    %4 = vector.load %arg3[%c0_3, %c0_4] : memref<1x512xf32, #tpu.memory_space<vmem>>, vector<1x512xf32>
    %5 = vector.broadcast %4 : vector<1x512xf32> to vector<2x512xf32>
    %6 = arith.addf %3, %5 : vector<2x512xf32>
    %cst_5 = arith.constant 0.000000e+00 : f32
    %7 = vector.broadcast %cst_5 : f32 to vector<2x512xf32>
    %8 = arith.maximumf %6, %7 : vector<2x512xf32>
    %9 = arith.truncf %8 : vector<2x512xf32> to vector<2x512xbf16>
    %c0_6 = arith.constant 0 : index
    %c0_7 = arith.constant 0 : index
    %10 = vector.load %arg4[%c0_6, %c0_7] : memref<512x128xbf16, #tpu.memory_space<vmem>>, vector<512x128xbf16>
    %cst_8 = arith.constant dense<0.000000e+00> : vector<2x128xf32>
    %11 = tpu.matmul %9, %10, %cst_8 {dimension_numbers = #tpu.dot_dimension_numbers<[1], [0], [0], [1], [0, 0, 1, 1], [], []>} : vector<2x512xbf16>, vector<512x128xbf16>, vector<2x128xf32> -> vector<2x128xf32>
    %c0_9 = arith.constant 0 : index
    %c0_10 = arith.constant 0 : index
    %12 = vector.load %arg5[%c0_9, %c0_10] : memref<1x128xf32, #tpu.memory_space<vmem>>, vector<1x128xf32>
    %13 = vector.broadcast %12 : vector<1x128xf32> to vector<2x128xf32>
    %14 = arith.addf %11, %13 : vector<2x128xf32>
    %c0_11 = arith.constant 0 : index
    %c0_12 = arith.constant 0 : index
    %15 = vector.load %arg6[%c0_11, %c0_12] : memref<2x128xf32, #tpu.memory_space<vmem>>, vector<2x128xf32>
    tpu.vector_store %arg6[%c0_11, %c0_12], %14 {strides = array<i32>} : memref<2x128xf32, #tpu.memory_space<vmem>>, vector<2x128xf32>,
    return
  }
  func.func @transform_0(%arg0: i32) -> (i32, i32) {
    %c0_i32 = arith.constant 0 : i32
    %c0_i32_0 = arith.constant 0 : i32
    return %arg0, %c0_i32 : i32, i32
  }
  func.func @transform_1(%arg0: i32) -> (i32, i32) {
    %c0_i32 = arith.constant 0 : i32
    %c0_i32_0 = arith.constant 0 : i32
    %c0_i32_1 = arith.constant 0 : i32
    return %c0_i32, %c0_i32_0 : i32, i32
  }
  func.func @transform_2(%arg0: i32) -> (i32, i32) {
    %c0_i32 = arith.constant 0 : i32
    %c0_i32_0 = arith.constant 0 : i32
    %c0_i32_1 = arith.constant 0 : i32
    return %c0_i32, %c0_i32_0 : i32, i32
  }
  func.func @transform_3(%arg0: i32) -> (i32, i32) {
    %c0_i32 = arith.constant 0 : i32
    %c0_i32_0 = arith.constant 0 : i32
    %c0_i32_1 = arith.constant 0 : i32
    return %c0_i32, %c0_i32_0 : i32, i32
  }
  func.func @transform_4(%arg0: i32) -> (i32, i32) {
    %c0_i32 = arith.constant 0 : i32
    %c0_i32_0 = arith.constant 0 : i32
    %c0_i32_1 = arith.constant 0 : i32
    return %c0_i32, %c0_i32_0 : i32, i32
  }
  func.func @transform_5(%arg0: i32) -> (i32, i32) {
    %c0_i32 = arith.constant 0 : i32
    %c0_i32_0 = arith.constant 0 : i32
    return %arg0, %c0_i32 : i32, i32
  }
}

</mosaic_0001>

<bundles_post_ra>
// kernel: tpu_custom_call.1
= control target key start
LH: loop header
LB: loop body
LE: loop exit
PB: predicated region body
PF: predicated region fallthrough
CT: control target
= control target key end

     0   :  { %10 = vsyncpa [#allocation3], 0  ;;  %s3380_s0 = inlined_call_operand.hbm [shape: f32[2,1024], index: 0, kind: input, shape index: {}]   ;;  %s3381_s1 = inlined_call_operand.hbm [shape: bf16[1024,512], index: 1, kind: input, shape index: {}]   ;;  %s3382_s2 = inlined_call_operand.vmem [shape: f32[1,512], index: 2, kind: input, shape index: {}]   ;;  %s3383_s3 = inlined_call_operand.hbm [shape: bf16[512,128], index: 3, kind: input, shape index: {}]   ;;  %s3384_s4 = inlined_call_operand.vmem [shape: f32[1,128], index: 4, kind: input, shape index: {}]   ;;  %s3385_s5 = inlined_call_operand.hbm [shape: f32[2,128], index: 5, kind: output, shape index: {}]  }
   0x1   :  { %11 = vsyncpa [#allocation6], 0 }
   0x2   :  { %12 = vsyncpa [#allocation4], 0  ;;  %s3251_s18 = smov [#allocation5]   ;;  %s3157_s22 = scalar_lea.hbm %s3381_s1, 32768 }
   0x3   :  { %s28_s19 = sshll.u32 %s3251_s18, 4  ;;  %p3158_p0 = scmp.ne.s32.totalorder %s3381_s1, %s3157_s22  ;;  %s29_s19 = int_to_ptr.vmem [resolvable:$true] %s28_s19 }
   0x4   :  { %p3161_p1 = scmp.lt.u32.totalorder %s3157_s22, %s3381_s1 }
   0x6   :  { %p3163_p2 = pnand %p3161_p1, %p3158_p0 }
   0x8   :  { %3166 = shalt.err (!%p3163_p2)
}
   0x9   :  { %s3167_s27 = scalar_lea.vmem %s29_s19, 32768  ;;  %p3172_p4 = scmp.lt.s32.totalorder %s29_s19, %s29_s19 }
   0xa   :  { %p3168_p3 = scmp.ne.s32.totalorder %s29_s19, %s3167_s27  ;;  %p3173_p5 = scmp.lt.s32.totalorder %s3167_s27, %s3167_s27 }
   0xc   :  { %p3174_p6 = por %p3173_p5, %p3172_p4 }
   0xe   :  { %p3175_p7 = pnand %p3174_p6, %p3168_p3 }
  0x10   :  { %3178 = shalt.err (!%p3175_p7)
}
  0x11   :  { %s3252_s28 = smov 256   ;;  %s3253_s29 = smov 16  }
  0x12   :  { %34 = dma.hbm_to_vmem [thread:$0]  %s3381_s1, 32768, %s29_s19, [#allocation6], %s3252_s28, %s3252_s28, %s3253_s29  }
  0x13   :  { %s3254_s7 = smov [#allocation2]   ;;  %s3255_s9 = smov [#allocation7]  }
  0x14   :  { %s19_s8 = sshll.u32 %s3254_s7, 4  ;;  %s42_s10 = sshll.u32 %s3255_s9, 4  ;;  %s20_s8 = int_to_ptr.vmem [resolvable:$true] %s19_s8  ;;  %s43_s10 = int_to_ptr.vmem [resolvable:$true] %s42_s10 }
  0x15   :  { %s3179_s13 = scalar_lea.hbm %s3380_s0, 256 }
  0x16   :  { %p3180_p8 = scmp.ne.s32.totalorder %s3380_s0, %s3179_s13  ;;  %p3183_p9 = scmp.lt.u32.totalorder %s3179_s13, %s3380_s0 }
  0x18   :  { %p3185_p10 = pnand %p3183_p9, %p3180_p8 }
  0x1a   :  { %3188 = shalt.err (!%p3185_p10)
}
  0x1b   :  { %s3189_s1 = scalar_lea.vmem %s20_s8, 256  ;;  %p3194_p12 = scmp.lt.s32.totalorder %s20_s8, %s20_s8 }
  0x1c   :  { %p3190_p11 = scmp.ne.s32.totalorder %s20_s8, %s3189_s1  ;;  %p3195_p13 = scmp.lt.s32.totalorder %s3189_s1, %s3189_s1 }
  0x1e   :  { %p3196_p0 = por %p3195_p13, %p3194_p12 }
  0x20   :  { %p3197_p1 = pnand %p3196_p0, %p3190_p11 }
  0x22   :  { %3200 = shalt.err (!%p3197_p1)
}
  0x23   :  { %22 = dma.hbm_to_vmem [thread:$0]  %s3380_s0, 256, %s20_s8, [#allocation3]  }
  0x24   :  { %s3201_s22 = scalar_lea.hbm %s3383_s3, 4096 }
  0x25   :  { %p3202_p2 = scmp.ne.s32.totalorder %s3383_s3, %s3201_s22  ;;  %p3205_p3 = scmp.lt.u32.totalorder %s3201_s22, %s3383_s3 }
  0x27   :  { %p3207_p4 = pnand %p3205_p3, %p3202_p2 }
  0x29   :  { %3210 = shalt.err (!%p3207_p4)
}
  0x2a   :  { %s3211_s27 = scalar_lea.vmem %s43_s10, 4096  ;;  %p3216_p6 = scmp.lt.s32.totalorder %s43_s10, %s43_s10 }
  0x2b   :  { %p3212_p5 = scmp.ne.s32.totalorder %s43_s10, %s3211_s27  ;;  %p3217_p7 = scmp.lt.s32.totalorder %s3211_s27, %s3211_s27 }
  0x2d   :  { %p3218_p8 = por %p3217_p7, %p3216_p6 }
  0x2f   :  { %p3219_p9 = pnand %p3218_p8, %p3212_p5 }
  0x31   :  { %3222 = shalt.err (!%p3219_p9)
}
  0x32   :  { %s3256_s0 = smov 64   ;;  %s3257_s28 = smov 4  }
  0x33   :  { %48 = dma.hbm_to_vmem [thread:$0]  %s3383_s3, 4096, %s43_s10, [#allocation6], %s3256_s0, %s3256_s0, %s3257_s28  }
  0x34   :  { %3245 = dma.done.wait [#allocation3], 256  }
  0x35   :  { %3246 = vsyncadd [#allocation3], 4294967040 }
  0x36   :  { %3247 = dma.done.wait [#allocation6], 36864  }
  0x37   :  { %3248 = vsyncadd [#allocation6], 4294930432  ;;  %v2739_v0 = vld [vmem:[#allocation5 + $0x4] ss:$16 sps:$4 sm:$0xff]   ;;  %v2741_v1 = vld [vmem:[#allocation5 + $0xc] ss:$16 sps:$4 sm:$0xff]   ;;  %v69_v38 = vlaneseq }
  0x38   :  { %1673 = vmatprep.subr.bf16.mxu0 %v2739_v0  ;;  %v2743_v2 = vld [vmem:[#allocation5] ss:$16 sps:$4 sm:$0xff]   ;;  %v2744_v3 = vld [vmem:[#allocation5 + $0x8] ss:$16 sps:$4 sm:$0xff]   ;;  %1837 = vmatprep.subr.bf16.mxu1 %v2741_v1  ;;  %v2745_v4 = vld [vmem:[#allocation5 + $0x24] ss:$16 sps:$4 sm:$0xff]  }
  0x39   :  { %1674 = vmatpush1.bf16.msra.mxu0 %v2743_v2  ;;  %1838 = vmatpush1.bf16.msra.mxu1 %v2744_v3  ;;  %v2747_v5 = vld [vmem:[#allocation5 + $0x2c] ss:$16 sps:$4 sm:$0xff]   ;;  %v2749_v6 = vld [vmem:[#allocation5 + $0x20] ss:$16 sps:$4 sm:$0xff]   ;;  %v2750_v7 = vld [vmem:[#allocation5 + $0x28] ss:$16 sps:$4 sm:$0xff]  }
  0x3a   :  { %1675 = vmatprep.subr.bf16.mxu0 %v2745_v4  ;;  %1839 = vmatprep.subr.bf16.mxu1 %v2747_v5  ;;  %v2751_v8 = vld [vmem:[#allocation5 + $0x44] ss:$16 sps:$4 sm:$0xff]   ;;  %v2753_v9 = vld [vmem:[#allocation5 + $0x4c] ss:$16 sps:$4 sm:$0xff]   ;;  %v2755_v10 = vld [vmem:[#allocation5 + $0x40] ss:$16 sps:$4 sm:$0xff]  }
  0x3b   :  { %v2756_v11 = vld [vmem:[#allocation5 + $0x48] ss:$16 sps:$4 sm:$0xff]   ;;  %v2757_v12 = vld [vmem:[#allocation5 + $0x64] ss:$16 sps:$4 sm:$0xff]   ;;  %v2759_v13 = vld [vmem:[#allocation5 + $0x6c] ss:$16 sps:$4 sm:$0xff]  }
  0x3c   :  { %v2761_v14 = vld [vmem:[#allocation5 + $0x60] ss:$16 sps:$4 sm:$0xff]   ;;  %v2762_v15 = vld [vmem:[#allocation5 + $0x68] ss:$16 sps:$4 sm:$0xff]   ;;  %v2763_v16 = vld [vmem:[#allocation5 + $0x84] ss:$16 sps:$4 sm:$0xff]  }
  0x3d   :  { %1676 = vmatpush1.bf16.msra.mxu0 %v2749_v6  ;;  %1840 = vmatpush1.bf16.msra.mxu1 %v2750_v7  ;;  %v2765_v17 = vld [vmem:[#allocation5 + $0x8c] ss:$16 sps:$4 sm:$0xff]   ;;  %v2767_v18 = vld [vmem:[#allocation5 + $0x80] ss:$16 sps:$4 sm:$0xff]   ;;  %v2768_v19 = vld [vmem:[#allocation5 + $0x88] ss:$16 sps:$4 sm:$0xff]  }
  0x3e   :  { %1677 = vmatprep.subr.bf16.mxu0 %v2751_v8  ;;  %1841 = vmatprep.subr.bf16.mxu1 %v2753_v9  ;;  %v2769_v20 = vld [vmem:[#allocation5 + $0xa4] ss:$16 sps:$4 sm:$0xff]   ;;  %v2771_v21 = vld [vmem:[#allocation5 + $0xac] ss:$16 sps:$4 sm:$0xff]   ;;  %v2773_v22 = vld [vmem:[#allocation5 + $0xa0] ss:$16 sps:$4 sm:$0xff]  }
  0x3f   :  { %v2774_v23 = vld [vmem:[#allocation5 + $0xa8] ss:$16 sps:$4 sm:$0xff]   ;;  %v2775_v24 = vld [vmem:[#allocation5 + $0xc4] ss:$16 sps:$4 sm:$0xff]   ;;  %v2777_v25 = vld [vmem:[#allocation5 + $0xcc] ss:$16 sps:$4 sm:$0xff]  }
  0x40   :  { %v2779_v26 = vld [vmem:[#allocation5 + $0xc0] ss:$16 sps:$4 sm:$0xff]   ;;  %v2780_v27 = vld [vmem:[#allocation5 + $0xc8] ss:$16 sps:$4 sm:$0xff]   ;;  %v2781_v28 = vld [vmem:[#allocation5 + $0xe4] ss:$16 sps:$4 sm:$0xff]  }
  0x41   :  { %1678 = vmatpush1.bf16.msra.mxu0 %v2755_v10  ;;  %1842 = vmatpush1.bf16.msra.mxu1 %v2756_v11  ;;  %v2783_v29 = vld [vmem:[#allocation5 + $0xec] ss:$16 sps:$4 sm:$0xff]   ;;  %v2785_v30 = vld [vmem:[#allocation5 + $0xe0] ss:$16 sps:$4 sm:$0xff]   ;;  %v2786_v31 = vld [vmem:[#allocation5 + $0xe8] ss:$16 sps:$4 sm:$0xff]  }
  0x42   :  { %1679 = vmatprep.subr.bf16.mxu0 %v2757_v12  ;;  %1843 = vmatprep.subr.bf16.mxu1 %v2759_v13  ;;  %v2787_v32 = vld [vmem:[#allocation5 + $0x104] ss:$16 sps:$4 sm:$0xff]   ;;  %v2789_v33 = vld [vmem:[#allocation5 + $0x10c] ss:$16 sps:$4 sm:$0xff]   ;;  %v2791_v34 = vld [vmem:[#allocation5 + $0x100] ss:$16 sps:$4 sm:$0xff]  }
  0x43   :  { %v2792_v35 = vld [vmem:[#allocation5 + $0x108] ss:$16 sps:$4 sm:$0xff]   ;;  %v3258_v36 = vmov 1983009808   ;;  %v2793_v39 = vld [vmem:[#allocation5 + $0x124] ss:$16 sps:$4 sm:$0xff]  }
  0x44   :  { %v67_v37 = vunpack.c.l.s4 %v3258_v36  ;;  %v2795_v40 = vld [vmem:[#allocation5 + $0x12c] ss:$16 sps:$4 sm:$0xff]   ;;  %v2797_v41 = vld [vmem:[#allocation5 + $0x120] ss:$16 sps:$4 sm:$0xff]   ;;  %v3326_v43 = vshrl.u32 %v69_v38, 7  ;;  %s3259_s8 = smov [#allocation8]  }
  0x45   :  { %1680 = vmatpush1.bf16.msra.mxu0 %v2761_v14  ;;  %1844 = vmatpush1.bf16.msra.mxu1 %v2762_v15  ;;  %v2798_v44 = vld [vmem:[#allocation5 + $0x128] ss:$16 sps:$4 sm:$0xff]   ;;  %v2799_v45 = vld [vmem:[#allocation5 + $0x144] ss:$16 sps:$4 sm:$0xff]   ;;  %v2801_v46 = vld [vmem:[#allocation5 + $0x14c] ss:$16 sps:$4 sm:$0xff]  }
  0x46   :  { %1681 = vmatprep.subr.bf16.mxu0 %v2763_v16  ;;  %1845 = vmatprep.subr.bf16.mxu1 %v2765_v17  ;;  %v68_v42 = vunpack.c.0.s8 %v67_v37  ;;  %v2803_v47 = vld [vmem:[#allocation5 + $0x140] ss:$16 sps:$4 sm:$0xff]   ;;  %v2804_v48 = vld [vmem:[#allocation5 + $0x148] ss:$16 sps:$4 sm:$0xff]   ;;  %v2805_v50 = vld [vmem:[#allocation5 + $0x164] ss:$16 sps:$4 sm:$0xff]  }
  0x47   :  { %v2807_v51 = vld [vmem:[#allocation5 + $0x16c] ss:$16 sps:$4 sm:$0xff]   ;;  %v61_v52 = vld [vmem:[#allocation2] sm:$0xff]  ;;  %v2810_v55 = vld [vmem:[#allocation5 + $0x168] ss:$16 sps:$4 sm:$0xff]   ;;  %s2359_s9 = sshll.u32 %s3259_s8, 4  ;;  %s2360_s9 = int_to_ptr.vmem [resolvable:$true] %s2359_s9 }
  0x48   :  { %v3329_v49 = vsub.s32 %v68_v42, %v3326_v43  ;;  %v2809_v53 = vld [vmem:[#allocation5 + $0x160] ss:$16 sps:$4 sm:$0xff]   ;;  %v2811_v56 = vld [vmem:[#allocation5 + $0x184] ss:$16 sps:$4 sm:$0xff]   ;;  %v2813_v57 = vld [vmem:[#allocation5 + $0x18c] ss:$16 sps:$4 sm:$0xff]   ;;  %v65_v4 = vcombine.high %v61_v52, %v61_v52  ;;  %p3228_p11 = scmp.lt.s32.totalorder %s2360_s9, %s2360_s9 }
  0x49   :  { %1682 = vmatpush1.bf16.msra.mxu0 %v2767_v18  ;;  %1846 = vmatpush1.bf16.msra.mxu1 %v2768_v19  ;;  %v2815_v59 = vld [vmem:[#allocation5 + $0x180] ss:$16 sps:$4 sm:$0xff]   ;;  %v2816_v61 = vld [vmem:[#allocation5 + $0x188] ss:$16 sps:$4 sm:$0xff]   ;;  %v2817_v62 = vld [vmem:[#allocation5 + $0x1a4] ss:$16 sps:$4 sm:$0xff]  }
  0x4a   :  { %1683 = vmatprep.subr.bf16.mxu0 %v2769_v20  ;;  %1847 = vmatprep.subr.bf16.mxu1 %v2771_v21  ;;  %v72_v54 = vrot.slane %v61_v52, %v3329_v49  ;;  %v2819_v63 = vld [vmem:[#allocation5 + $0x1ac] ss:$16 sps:$4 sm:$0xff]   ;;  %v2821_v0 = vld [vmem:[#allocation5 + $0x1a0] ss:$16 sps:$4 sm:$0xff]   ;;  %v2822_v1 = vld [vmem:[#allocation5 + $0x1a8] ss:$16 sps:$4 sm:$0xff]   ;;  %v3333_v9 = vrot.slane %v65_v4, %v3329_v49 }
  0x4b   :  { %v2823_v2 = vld [vmem:[#allocation5 + $0x1c4] ss:$16 sps:$4 sm:$0xff]   ;;  %v2825_v3 = vld [vmem:[#allocation5 + $0x1cc] ss:$16 sps:$4 sm:$0xff]   ;;  %v2827_v5 = vld [vmem:[#allocation5 + $0x1c0] ss:$16 sps:$4 sm:$0xff]  }
  0x4c   :  { %v80_v58 = vcombine.high %v72_v54, %v72_v54  ;;  %v2828_v6 = vld [vmem:[#allocation5 + $0x1c8] ss:$16 sps:$4 sm:$0xff]   ;;  %v2829_v7 = vld [vmem:[#allocation5 + $0x1e4] ss:$16 sps:$4 sm:$0xff]   ;;  %v2831_v8 = vld [vmem:[#allocation5 + $0x1ec] ss:$16 sps:$4 sm:$0xff]   ;;  %v81_v14 = vcombine.high %v3333_v9, %v3333_v9  ;;  %v107_v16 = vpack.c.bf16 %v72_v54, %v72_v54 }
  0x4d   :  { %1684 = vmatpush1.bf16.msra.mxu0 %v2773_v22  ;;  %1848 = vmatpush1.bf16.msra.mxu1 %v2774_v23  ;;  %v2833_v10 = vld [vmem:[#allocation5 + $0x1e0] ss:$16 sps:$4 sm:$0xff]   ;;  %v2834_v11 = vld [vmem:[#allocation5 + $0x1e8] ss:$16 sps:$4 sm:$0xff]   ;;  %v2838_v12 = vld [vmem:[#allocation5 + $0x204] ss:$16 sps:$4 sm:$0xff]  }
  0x4e   :  { %1685 = vmatprep.subr.bf16.mxu0 %v2775_v24  ;;  %1849 = vmatprep.subr.bf16.mxu1 %v2777_v25  ;;  %v108_v60 = vpack.c.bf16 %v80_v58, %v80_v58  ;;  %v2841_v13 = vld [vmem:[#allocation5 + $0x20c] ss:$16 sps:$4 sm:$0xff]   ;;  %v2836_v15 = vld [vmem:[#allocation5 + $0x200] ss:$16 sps:$4 sm:$0xff]   ;;  %v2839_v17 = vld [vmem:[#allocation5 + $0x208] ss:$16 sps:$4 sm:$0xff]   ;;  %v110_v20 = vpack.c.bf16 %v81_v14, %v81_v14 }
  0x4f   :  { %v2844_v18 = vld [vmem:[#allocation5 + $0x224] ss:$16 sps:$4 sm:$0xff]   ;;  %v2847_v19 = vld [vmem:[#allocation5 + $0x22c] ss:$16 sps:$4 sm:$0xff]   ;;  %v2842_v21 = vld [vmem:[#allocation5 + $0x220] ss:$16 sps:$4 sm:$0xff]  }
  0x50   :  { %1705 = vmatprep.mubr.bf16.mxu0 %v108_v60  ;;  %1869 = vmatprep.mubr.bf16.mxu1 %v108_v60  ;;  %v2845_v22 = vld [vmem:[#allocation5 + $0x228] ss:$16 sps:$4 sm:$0xff]   ;;  %v2850_v23 = vld [vmem:[#allocation5 + $0x244] ss:$16 sps:$4 sm:$0xff]   ;;  %v2853_v24 = vld [vmem:[#allocation5 + $0x24c] ss:$16 sps:$4 sm:$0xff]  }
  0x51   :  { %1686 = vmatpush1.bf16.msra.mxu0 %v2779_v26  ;;  %1850 = vmatpush1.bf16.msra.mxu1 %v2780_v27  ;;  %v2848_v25 = vld [vmem:[#allocation5 + $0x240] ss:$16 sps:$4 sm:$0xff]   ;;  %v2851_v26 = vld [vmem:[#allocation5 + $0x248] ss:$16 sps:$4 sm:$0xff]   ;;  %v2856_v27 = vld [vmem:[#allocation5 + $0x264] ss:$16 sps:$4 sm:$0xff]  }
  0x52   :  { %1687 = vmatprep.subr.bf16.mxu0 %v2781_v28  ;;  %1851 = vmatprep.subr.bf16.mxu1 %v2783_v29  ;;  %v2859_v28 = vld [vmem:[#allocation5 + $0x26c] ss:$16 sps:$4 sm:$0xff]   ;;  %v2854_v29 = vld [vmem:[#allocation5 + $0x260] ss:$16 sps:$4 sm:$0xff]   ;;  %v2869_v38 = vld [vmem:[#allocation5 + $0x2a8] ss:$16 sps:$4 sm:$0xff]  }
  0x53   :  { %v2871_v36 = vld [vmem:[#allocation5 + $0x2ac] ss:$16 sps:$4 sm:$0xff]   ;;  %v2866_v37 = vld [vmem:[#allocation5 + $0x2a0] ss:$16 sps:$4 sm:$0xff]   ;;  %v2875_v42 = vld [vmem:[#allocation5 + $0x2c8] ss:$16 sps:$4 sm:$0xff]  }
  0x54   :  { %v2887_v52 = vld [vmem:[#allocation5 + $0x308] ss:$16 sps:$4 sm:$0xff]   ;;  %v2895_v54 = vld [vmem:[#allocation5 + $0x32c] ss:$16 sps:$4 sm:$0xff]   ;;  %v2928_v14 = vld [vmem:[#allocation5 + $0x3e4] ss:$16 sps:$4 sm:$0xff]  }
  0x55   :  { %1688 = vmatpush1.bf16.msra.mxu0 %v2785_v30  ;;  %1852 = vmatpush1.bf16.msra.mxu1 %v2786_v31  ;;  %v2857_v30 = vld [vmem:[#allocation5 + $0x268] ss:$16 sps:$4 sm:$0xff]   ;;  %v2862_v31 = vld [vmem:[#allocation5 + $0x284] ss:$16 sps:$4 sm:$0xff]   ;;  %v2901_v58 = vld [vmem:[#allocation5 + $0x34c] ss:$16 sps:$4 sm:$0xff]  }
  0x56   :  { %1689 = vmatprep.subr.bf16.mxu0 %v2787_v32  ;;  %1853 = vmatprep.subr.bf16.mxu1 %v2789_v33  ;;  %v2865_v32 = vld [vmem:[#allocation5 + $0x28c] ss:$16 sps:$4 sm:$0xff]   ;;  %v2860_v33 = vld [vmem:[#allocation5 + $0x280] ss:$16 sps:$4 sm:$0xff]   ;;  %v2899_v60 = vld [vmem:[#allocation5 + $0x348] ss:$16 sps:$4 sm:$0xff]  }
  0x57   :  { %v2911_v4 = vld [vmem:[#allocation5 + $0x388] ss:$16 sps:$4 sm:$0xff]   ;;  %s3223_s10 = scalar_lea.vmem %s2360_s9, 32 }
  0x58   :  { %p3224_p10 = scmp.ne.s32.totalorder %s2360_s9, %s3223_s10  ;;  %p3229_p12 = scmp.lt.s32.totalorder %s3223_s10, %s3223_s10 }
  0x59   :  { %1690 = vmatpush1.bf16.msra.mxu0 %v2791_v34  ;;  %1854 = vmatpush1.bf16.msra.mxu1 %v2792_v35  ;;  %v2863_v34 = vld [vmem:[#allocation5 + $0x288] ss:$16 sps:$4 sm:$0xff]   ;;  %v2868_v35 = vld [vmem:[#allocation5 + $0x2a4] ss:$16 sps:$4 sm:$0xff]  }
  0x5a   :  { %1691 = vmatprep.subr.bf16.mxu0 %v2793_v39  ;;  %1855 = vmatprep.subr.bf16.mxu1 %v2795_v40  ;;  %v2874_v39 = vld [vmem:[#allocation5 + $0x2c4] ss:$16 sps:$4 sm:$0xff]   ;;  %v2877_v40 = vld [vmem:[#allocation5 + $0x2cc] ss:$16 sps:$4 sm:$0xff]   ;;  %p3230_p13 = por %p3229_p12, %p3228_p11 }
  0x5c   :  { %p3231_p0 = pnand %p3230_p13, %p3224_p10 }
  0x5d   :  { %1692 = vmatpush1.bf16.msra.mxu0 %v2797_v41  ;;  %1856 = vmatpush1.bf16.msra.mxu1 %v2798_v44  ;;  %v2872_v41 = vld [vmem:[#allocation5 + $0x2c0] ss:$16 sps:$4 sm:$0xff]   ;;  %v2880_v44 = vld [vmem:[#allocation5 + $0x2e4] ss:$16 sps:$4 sm:$0xff]  }
  0x5e   :  { %1693 = vmatprep.subr.bf16.mxu0 %v2799_v45  ;;  %1857 = vmatprep.subr.bf16.mxu1 %v2801_v46  ;;  %v2883_v45 = vld [vmem:[#allocation5 + $0x2ec] ss:$16 sps:$4 sm:$0xff]   ;;  %v2878_v46 = vld [vmem:[#allocation5 + $0x2e0] ss:$16 sps:$4 sm:$0xff]  }
  0x61   :  { %1694 = vmatpush1.bf16.msra.mxu0 %v2803_v47  ;;  %1858 = vmatpush1.bf16.msra.mxu1 %v2804_v48  ;;  %v2881_v47 = vld [vmem:[#allocation5 + $0x2e8] ss:$16 sps:$4 sm:$0xff]   ;;  %v2886_v48 = vld [vmem:[#allocation5 + $0x304] ss:$16 sps:$4 sm:$0xff]  }
  0x62   :  { %1695 = vmatprep.subr.bf16.mxu0 %v2805_v50  ;;  %1859 = vmatprep.subr.bf16.mxu1 %v2807_v51  ;;  %v2889_v50 = vld [vmem:[#allocation5 + $0x30c] ss:$16 sps:$4 sm:$0xff]   ;;  %v2884_v51 = vld [vmem:[#allocation5 + $0x300] ss:$16 sps:$4 sm:$0xff]  }
  0x65   :  { %1696 = vmatpush1.bf16.msra.mxu0 %v2809_v53  ;;  %1860 = vmatpush1.bf16.msra.mxu1 %v2810_v55  ;;  %v2892_v53 = vld [vmem:[#allocation5 + $0x324] ss:$16 sps:$4 sm:$0xff]   ;;  %v2890_v55 = vld [vmem:[#allocation5 + $0x320] ss:$16 sps:$4 sm:$0xff]  }
  0x66   :  { %1697 = vmatprep.subr.bf16.mxu0 %v2811_v56  ;;  %1861 = vmatprep.subr.bf16.mxu1 %v2813_v57  ;;  %v2893_v56 = vld [vmem:[#allocation5 + $0x328] ss:$16 sps:$4 sm:$0xff]   ;;  %v2898_v57 = vld [vmem:[#allocation5 + $0x344] ss:$16 sps:$4 sm:$0xff]  }
  0x69   :  { %1698 = vmatpush1.bf16.msra.mxu0 %v2815_v59  ;;  %1862 = vmatpush1.bf16.msra.mxu1 %v2816_v61  ;;  %v2896_v59 = vld [vmem:[#allocation5 + $0x340] ss:$16 sps:$4 sm:$0xff]   ;;  %v2904_v61 = vld [vmem:[#allocation5 + $0x364] ss:$16 sps:$4 sm:$0xff]  }
  0x6a   :  { %1699 = vmatprep.subr.bf16.mxu0 %v2817_v62  ;;  %1863 = vmatprep.subr.bf16.mxu1 %v2819_v63  ;;  %v2907_v62 = vld [vmem:[#allocation5 + $0x36c] ss:$16 sps:$4 sm:$0xff]   ;;  %v2902_v63 = vld [vmem:[#allocation5 + $0x360] ss:$16 sps:$4 sm:$0xff]  }
  0x6d   :  { %1700 = vmatpush1.bf16.msra.mxu0 %v2821_v0  ;;  %1864 = vmatpush1.bf16.msra.mxu1 %v2822_v1  ;;  %v2905_v0 = vld [vmem:[#allocation5 + $0x368] ss:$16 sps:$4 sm:$0xff]   ;;  %v2910_v1 = vld [vmem:[#allocation5 + $0x384] ss:$16 sps:$4 sm:$0xff]  }
  0x6e   :  { %1701 = vmatprep.subr.bf16.mxu0 %v2823_v2  ;;  %1865 = vmatprep.subr.bf16.mxu1 %v2825_v3  ;;  %v2913_v2 = vld [vmem:[#allocation5 + $0x38c] ss:$16 sps:$4 sm:$0xff]   ;;  %v2908_v3 = vld [vmem:[#allocation5 + $0x380] ss:$16 sps:$4 sm:$0xff]  }
  0x71   :  { %1702 = vmatpush1.bf16.msra.mxu0 %v2827_v5  ;;  %1866 = vmatpush1.bf16.msra.mxu1 %v2828_v6  ;;  %v2916_v5 = vld [vmem:[#allocation5 + $0x3a4] ss:$16 sps:$4 sm:$0xff]   ;;  %v2919_v6 = vld [vmem:[#allocation5 + $0x3ac] ss:$16 sps:$4 sm:$0xff]  }
  0x72   :  { %1703 = vmatprep.subr.bf16.mxu0 %v2829_v7  ;;  %1867 = vmatprep.subr.bf16.mxu1 %v2831_v8  ;;  %v2914_v7 = vld [vmem:[#allocation5 + $0x3a0] ss:$16 sps:$4 sm:$0xff]   ;;  %v2917_v8 = vld [vmem:[#allocation5 + $0x3a8] ss:$16 sps:$4 sm:$0xff]  }
  0x75   :  { %1704 = vmatpush1.bf16.msra.mxu0 %v2833_v10  ;;  %1868 = vmatpush1.bf16.msra.mxu1 %v2834_v11  ;;  %v2922_v10 = vld [vmem:[#allocation5 + $0x3c4] ss:$16 sps:$4 sm:$0xff]   ;;  %v2925_v11 = vld [vmem:[#allocation5 + $0x3cc] ss:$16 sps:$4 sm:$0xff]  }
  0x76   :  { %1714 = vmatprep.subr.bf16.mxu0 %v2838_v12  ;;  %1878 = vmatprep.subr.bf16.mxu1 %v2841_v13  ;;  %v2920_v12 = vld [vmem:[#allocation5 + $0x3c0] ss:$16 sps:$4 sm:$0xff]   ;;  %v2923_v13 = vld [vmem:[#allocation5 + $0x3c8] ss:$16 sps:$4 sm:$0xff]  }
  0x78   :  { %1706 = vmatmul.mubr.bf16.vlgmr.msra.gmra.mrb[0].mxu0 %v107_v16  ;;  %1870 = vmatmul.mubr.bf16.vlgmr.msra.gmra.mrb[0].mxu1 %v107_v16  ;;  %v2926_v16 = vld [vmem:[#allocation5 + $0x3e0] ss:$16 sps:$4 sm:$0xff]  }
  0x79   :  { %1715 = vmatpush1.bf16.msra.mxu0 %v2836_v15  ;;  %1879 = vmatpush1.bf16.msra.mxu1 %v2839_v17  ;;  %v2931_v15 = vld [vmem:[#allocation5 + $0x3ec] ss:$16 sps:$4 sm:$0xff]   ;;  %v2929_v17 = vld [vmem:[#allocation5 + $0x3e8] ss:$16 sps:$4 sm:$0xff]  }
  0x7a   :  { %1716 = vmatprep.subr.bf16.mxu0 %v2844_v18  ;;  %1880 = vmatprep.subr.bf16.mxu1 %v2847_v19  ;;  %v2934_v18 = vld [vmem:[#allocation5 + $0x404] ss:$16 sps:$4 sm:$0xff]   ;;  %v2937_v19 = vld [vmem:[#allocation5 + $0x40c] ss:$16 sps:$4 sm:$0xff]  }
  0x7b   :  { %1746 = vmatprep.mubr.bf16.mxu0 %v110_v20  ;;  %1910 = vmatprep.mubr.bf16.mxu1 %v110_v20  ;;  %v2932_v20 = vld [vmem:[#allocation5 + $0x400] ss:$16 sps:$4 sm:$0xff]  }
  0x7d   :  { %1717 = vmatpush1.bf16.msra.mxu0 %v2842_v21  ;;  %1881 = vmatpush1.bf16.msra.mxu1 %v2845_v22  ;;  %v109_v21 = vpack.c.bf16 %v3333_v9, %v3333_v9  ;;  %v2935_v22 = vld [vmem:[#allocation5 + $0x408] ss:$16 sps:$4 sm:$0xff]   ;;  %v2938_v9 = vld [vmem:[#allocation5 + $0x420] ss:$16 sps:$4 sm:$0xff]  }
  0x7e   :  { %1718 = vmatprep.subr.bf16.mxu0 %v2850_v23  ;;  %1882 = vmatprep.subr.bf16.mxu1 %v2853_v24  ;;  %v3339_v23 = vld [vmem:[#allocation2 + $0x8] sm:$0xff]  ;;  %v2940_v24 = vld [vmem:[#allocation5 + $0x424] ss:$16 sps:$4 sm:$0xff]  }
  0x81   :  { %1719 = vmatpush1.bf16.msra.mxu0 %v2848_v25  ;;  %1883 = vmatpush1.bf16.msra.mxu1 %v2851_v26  ;;  %v2943_v25 = vld [vmem:[#allocation5 + $0x42c] ss:$16 sps:$4 sm:$0xff]   ;;  %v3343_v26 = vrot.slane %v3339_v23, %v3329_v49 }
  0x82   :  { %1720 = vmatprep.subr.bf16.mxu0 %v2856_v27  ;;  %1884 = vmatprep.subr.bf16.mxu1 %v2859_v28  ;;  %v2941_v28 = vld [vmem:[#allocation5 + $0x428] ss:$16 sps:$4 sm:$0xff]  }
  0x83   :  { %v97_v27 = vcombine.high %v3343_v26, %v3343_v26 }
  0x85   :  { %1721 = vmatpush1.bf16.msra.mxu0 %v2854_v29  ;;  %1885 = vmatpush1.bf16.msra.mxu1 %v2857_v30  ;;  %v2946_v29 = vld [vmem:[#allocation5 + $0x444] ss:$16 sps:$4 sm:$0xff]   ;;  %v2949_v30 = vld [vmem:[#allocation5 + $0x44c] ss:$16 sps:$4 sm:$0xff]  }
  0x86   :  { %1722 = vmatprep.subr.bf16.mxu0 %v2862_v31  ;;  %1886 = vmatprep.subr.bf16.mxu1 %v2865_v32  ;;  %v112_v31 = vpack.c.bf16 %v97_v27, %v97_v27  ;;  %v2944_v32 = vld [vmem:[#allocation5 + $0x440] ss:$16 sps:$4 sm:$0xff]  }
  0x89   :  { %1723 = vmatpush1.bf16.msra.mxu0 %v2860_v33  ;;  %1887 = vmatpush1.bf16.msra.mxu1 %v2863_v34  ;;  %v2947_v33 = vld [vmem:[#allocation5 + $0x448] ss:$16 sps:$4 sm:$0xff]   ;;  %v2952_v34 = vld [vmem:[#allocation5 + $0x464] ss:$16 sps:$4 sm:$0xff]  }
  0x8a   :  { %1724 = vmatprep.subr.bf16.mxu0 %v2868_v35  ;;  %1888 = vmatprep.subr.bf16.mxu1 %v2871_v36  ;;  %v2955_v35 = vld [vmem:[#allocation5 + $0x46c] ss:$16 sps:$4 sm:$0xff]   ;;  %v2950_v36 = vld [vmem:[#allocation5 + $0x460] ss:$16 sps:$4 sm:$0xff]  }
  0x8d   :  { %1725 = vmatpush1.bf16.msra.mxu0 %v2866_v37  ;;  %1889 = vmatpush1.bf16.msra.mxu1 %v2869_v38  ;;  %v2953_v37 = vld [vmem:[#allocation5 + $0x468] ss:$16 sps:$4 sm:$0xff]   ;;  %v2958_v38 = vld [vmem:[#allocation5 + $0x484] ss:$16 sps:$4 sm:$0xff]  }
  0x8e   :  { %1726 = vmatprep.subr.bf16.mxu0 %v2874_v39  ;;  %1890 = vmatprep.subr.bf16.mxu1 %v2877_v40  ;;  %v2961_v39 = vld [vmem:[#allocation5 + $0x48c] ss:$16 sps:$4 sm:$0xff]   ;;  %v2956_v40 = vld [vmem:[#allocation5 + $0x480] ss:$16 sps:$4 sm:$0xff]  }
  0x91   :  { %1727 = vmatpush1.bf16.msra.mxu0 %v2872_v41  ;;  %1891 = vmatpush1.bf16.msra.mxu1 %v2875_v42  ;;  %v2959_v41 = vld [vmem:[#allocation5 + $0x488] ss:$16 sps:$4 sm:$0xff]   ;;  %v2964_v42 = vld [vmem:[#allocation5 + $0x4a4] ss:$16 sps:$4 sm:$0xff]  }
  0x92   :  { %1728 = vmatprep.subr.bf16.mxu0 %v2880_v44  ;;  %1892 = vmatprep.subr.bf16.mxu1 %v2883_v45  ;;  %v2967_v44 = vld [vmem:[#allocation5 + $0x4ac] ss:$16 sps:$4 sm:$0xff]   ;;  %v2962_v45 = vld [vmem:[#allocation5 + $0x4a0] ss:$16 sps:$4 sm:$0xff]  }
  0x95   :  { %1729 = vmatpush1.bf16.msra.mxu0 %v2878_v46  ;;  %1893 = vmatpush1.bf16.msra.mxu1 %v2881_v47  ;;  %v2965_v46 = vld [vmem:[#allocation5 + $0x4a8] ss:$16 sps:$4 sm:$0xff]   ;;  %v2970_v47 = vld [vmem:[#allocation5 + $0x4c4] ss:$16 sps:$4 sm:$0xff]  }
  0x96   :  { %1730 = vmatprep.subr.bf16.mxu0 %v2886_v48  ;;  %1894 = vmatprep.subr.bf16.mxu1 %v2889_v50  ;;  %v2973_v48 = vld [vmem:[#allocation5 + $0x4cc] ss:$16 sps:$4 sm:$0xff]   ;;  %v2968_v50 = vld [vmem:[#allocation5 + $0x4c0] ss:$16 sps:$4 sm:$0xff]  }
  0x99   :  { %1731 = vmatpush1.bf16.msra.mxu0 %v2884_v51  ;;  %1895 = vmatpush1.bf16.msra.mxu1 %v2887_v52  ;;  %v2971_v51 = vld [vmem:[#allocation5 + $0x4c8] ss:$16 sps:$4 sm:$0xff]   ;;  %v2976_v52 = vld [vmem:[#allocation5 + $0x4e4] ss:$16 sps:$4 sm:$0xff]  }
  0x9a   :  { %1732 = vmatprep.subr.bf16.mxu0 %v2892_v53  ;;  %1896 = vmatprep.subr.bf16.mxu1 %v2895_v54  ;;  %v2979_v53 = vld [vmem:[#allocation5 + $0x4ec] ss:$16 sps:$4 sm:$0xff]   ;;  %v2974_v54 = vld [vmem:[#allocation5 + $0x4e0] ss:$16 sps:$4 sm:$0xff]  }
  0x9d   :  { %1733 = vmatpush1.bf16.msra.mxu0 %v2890_v55  ;;  %1897 = vmatpush1.bf16.msra.mxu1 %v2893_v56  ;;  %v2977_v55 = vld [vmem:[#allocation5 + $0x4e8] ss:$16 sps:$4 sm:$0xff]   ;;  %v2982_v56 = vld [vmem:[#allocation5 + $0x504] ss:$16 sps:$4 sm:$0xff]  }
  0x9e   :  { %1734 = vmatprep.subr.bf16.mxu0 %v2898_v57  ;;  %1898 = vmatprep.subr.bf16.mxu1 %v2901_v58  ;;  %v2985_v57 = vld [vmem:[#allocation5 + $0x50c] ss:$16 sps:$4 sm:$0xff]   ;;  %v2980_v58 = vld [vmem:[#allocation5 + $0x500] ss:$16 sps:$4 sm:$0xff]  }
  0xa1   :  { %1735 = vmatpush1.bf16.msra.mxu0 %v2896_v59  ;;  %1899 = vmatpush1.bf16.msra.mxu1 %v2899_v60  ;;  %v2983_v59 = vld [vmem:[#allocation5 + $0x508] ss:$16 sps:$4 sm:$0xff]   ;;  %v2988_v60 = vld [vmem:[#allocation5 + $0x524] ss:$16 sps:$4 sm:$0xff]  }
  0xa2   :  { %1736 = vmatprep.subr.bf16.mxu0 %v2904_v61  ;;  %1900 = vmatprep.subr.bf16.mxu1 %v2907_v62  ;;  %v2991_v61 = vld [vmem:[#allocation5 + $0x52c] ss:$16 sps:$4 sm:$0xff]   ;;  %v2986_v62 = vld [vmem:[#allocation5 + $0x520] ss:$16 sps:$4 sm:$0xff]  }
  0xa5   :  { %1737 = vmatpush1.bf16.msra.mxu0 %v2902_v63  ;;  %1901 = vmatpush1.bf16.msra.mxu1 %v2905_v0  ;;  %v2989_v63 = vld [vmem:[#allocation5 + $0x528] ss:$16 sps:$4 sm:$0xff]   ;;  %v2994_v0 = vld [vmem:[#allocation5 + $0x544] ss:$16 sps:$4 sm:$0xff]  }
  0xa6   :  { %1738 = vmatprep.subr.bf16.mxu0 %v2910_v1  ;;  %1902 = vmatprep.subr.bf16.mxu1 %v2913_v2  ;;  %v2997_v1 = vld [vmem:[#allocation5 + $0x54c] ss:$16 sps:$4 sm:$0xff]   ;;  %v2992_v2 = vld [vmem:[#allocation5 + $0x540] ss:$16 sps:$4 sm:$0xff]  }
  0xa9   :  { %1739 = vmatpush1.bf16.msra.mxu0 %v2908_v3  ;;  %1903 = vmatpush1.bf16.msra.mxu1 %v2911_v4  ;;  %v2995_v3 = vld [vmem:[#allocation5 + $0x548] ss:$16 sps:$4 sm:$0xff]   ;;  %v3000_v4 = vld [vmem:[#allocation5 + $0x564] ss:$16 sps:$4 sm:$0xff]  }
  0xaa   :  { %1740 = vmatprep.subr.bf16.mxu0 %v2916_v5  ;;  %1904 = vmatprep.subr.bf16.mxu1 %v2919_v6  ;;  %v3003_v5 = vld [vmem:[#allocation5 + $0x56c] ss:$16 sps:$4 sm:$0xff]   ;;  %v2998_v6 = vld [vmem:[#allocation5 + $0x560] ss:$16 sps:$4 sm:$0xff]  }
  0xad   :  { %1741 = vmatpush1.bf16.msra.mxu0 %v2914_v7  ;;  %1905 = vmatpush1.bf16.msra.mxu1 %v2917_v8  ;;  %v3001_v7 = vld [vmem:[#allocation5 + $0x568] ss:$16 sps:$4 sm:$0xff]   ;;  %v3006_v8 = vld [vmem:[#allocation5 + $0x584] ss:$16 sps:$4 sm:$0xff]  }
  0xae   :  { %1742 = vmatprep.subr.bf16.mxu0 %v2922_v10  ;;  %1906 = vmatprep.subr.bf16.mxu1 %v2925_v11  ;;  %v3009_v10 = vld [vmem:[#allocation5 + $0x58c] ss:$16 sps:$4 sm:$0xff]   ;;  %v3004_v11 = vld [vmem:[#allocation5 + $0x580] ss:$16 sps:$4 sm:$0xff]  }
  0xb1   :  { %1743 = vmatpush1.bf16.msra.mxu0 %v2920_v12  ;;  %1907 = vmatpush1.bf16.msra.mxu1 %v2923_v13  ;;  %v3007_v12 = vld [vmem:[#allocation5 + $0x588] ss:$16 sps:$4 sm:$0xff]   ;;  %v3012_v13 = vld [vmem:[#allocation5 + $0x5a4] ss:$16 sps:$4 sm:$0xff]  }
  0xb2   :  { %1744 = vmatprep.subr.bf16.mxu0 %v2928_v14  ;;  %1908 = vmatprep.subr.bf16.mxu1 %v2931_v15  ;;  %v3015_v14 = vld [vmem:[#allocation5 + $0x5ac] ss:$16 sps:$4 sm:$0xff]   ;;  %v3010_v15 = vld [vmem:[#allocation5 + $0x5a0] ss:$16 sps:$4 sm:$0xff]  }
  0xb5   :  { %1745 = vmatpush1.bf16.msra.mxu0 %v2926_v16  ;;  %1909 = vmatpush1.bf16.msra.mxu1 %v2929_v17  ;;  %v3013_v16 = vld [vmem:[#allocation5 + $0x5a8] ss:$16 sps:$4 sm:$0xff]   ;;  %v3018_v17 = vld [vmem:[#allocation5 + $0x5c4] ss:$16 sps:$4 sm:$0xff]  }
  0xb6   :  { %1755 = vmatprep.subr.bf16.mxu0 %v2934_v18  ;;  %1919 = vmatprep.subr.bf16.mxu1 %v2937_v19  ;;  %v3021_v18 = vld [vmem:[#allocation5 + $0x5cc] ss:$16 sps:$4 sm:$0xff]   ;;  %v3016_v19 = vld [vmem:[#allocation5 + $0x5c0] ss:$16 sps:$4 sm:$0xff]  }
  0xb8   :  { %1747 = vmatmul.mubr.bf16.vlgmr.msra.gmra.mrb[0].mxu0 %v109_v21  ;;  %1911 = vmatmul.mubr.bf16.vlgmr.msra.gmra.mrb[0].mxu1 %v109_v21  ;;  %v3019_v21 = vld [vmem:[#allocation5 + $0x5c8] ss:$16 sps:$4 sm:$0xff]  }
  0xb9   :  { %1756 = vmatpush1.bf16.msra.mxu0 %v2932_v20  ;;  %1920 = vmatpush1.bf16.msra.mxu1 %v2935_v22  ;;  %v82_v20 = vcombine.high %v3339_v23, %v3339_v23  ;;  %v3024_v22 = vld [vmem:[#allocation5 + $0x5e4] ss:$16 sps:$4 sm:$0xff]  }
  0xba   :  { %1757 = vmatprep.subr.bf16.mxu0 %v2940_v24  ;;  %1921 = vmatprep.subr.bf16.mxu1 %v2943_v25  ;;  %v3027_v24 = vld [vmem:[#allocation5 + $0x5ec] ss:$16 sps:$4 sm:$0xff]   ;;  %v3022_v25 = vld [vmem:[#allocation5 + $0x5e0] ss:$16 sps:$4 sm:$0xff]  }
  0xbb   :  { %1787 = vmatprep.mubr.bf16.mxu0 %v112_v31  ;;  %1951 = vmatprep.mubr.bf16.mxu1 %v112_v31  ;;  %v3350_v27 = vrot.slane %v82_v20, %v3329_v49  ;;  %v3031_v31 = vld [vmem:[#allocation5 + $0x608] ss:$16 sps:$4 sm:$0xff]   ;;  %v3039_v49 = vld [vmem:[#allocation5 + $0x62c] ss:$16 sps:$4 sm:$0xff]  }
  0xbc   :  { %v3111_v20 = vld [vmem:[#allocation5 + $0x7ac] ss:$16 sps:$4 sm:$0xff]  }
  0xbd   :  { %1758 = vmatpush1.bf16.msra.mxu0 %v2938_v9  ;;  %1922 = vmatpush1.bf16.msra.mxu1 %v2941_v28  ;;  %v3025_v9 = vld [vmem:[#allocation5 + $0x5e8] ss:$16 sps:$4 sm:$0xff]   ;;  %v3030_v28 = vld [vmem:[#allocation5 + $0x604] ss:$16 sps:$4 sm:$0xff]   ;;  %v98_v23 = vcombine.high %v3350_v27, %v3350_v27 }
  0xbe   :  { %1759 = vmatprep.subr.bf16.mxu0 %v2946_v29  ;;  %1923 = vmatprep.subr.bf16.mxu1 %v2949_v30  ;;  %v3033_v29 = vld [vmem:[#allocation5 + $0x60c] ss:$16 sps:$4 sm:$0xff]   ;;  %v3028_v30 = vld [vmem:[#allocation5 + $0x600] ss:$16 sps:$4 sm:$0xff]  }
  0xc1   :  { %1760 = vmatpush1.bf16.msra.mxu0 %v2944_v32  ;;  %1924 = vmatpush1.bf16.msra.mxu1 %v2947_v33  ;;  %v111_v32 = vpack.c.bf16 %v3343_v26, %v3343_v26  ;;  %v3036_v33 = vld [vmem:[#allocation5 + $0x624] ss:$16 sps:$4 sm:$0xff]  }
  0xc2   :  { %1761 = vmatprep.subr.bf16.mxu0 %v2952_v34  ;;  %1925 = vmatprep.subr.bf16.mxu1 %v2955_v35  ;;  %v3034_v34 = vld [vmem:[#allocation5 + $0x620] ss:$16 sps:$4 sm:$0xff]   ;;  %v3037_v35 = vld [vmem:[#allocation5 + $0x628] ss:$16 sps:$4 sm:$0xff]   ;;  %v3048_v26 = vld [vmem:[#allocation5 + $0x664] ss:$16 sps:$4 sm:$0xff]  }
  0xc5   :  { %1762 = vmatpush1.bf16.msra.mxu0 %v2950_v36  ;;  %1926 = vmatpush1.bf16.msra.mxu1 %v2953_v37  ;;  %v114_v36 = vpack.c.bf16 %v98_v23, %v98_v23  ;;  %v3042_v37 = vld [vmem:[#allocation5 + $0x644] ss:$16 sps:$4 sm:$0xff]   ;;  %v3118_v23 = vld [vmem:[#allocation5 + $0x7e0] ss:$16 sps:$4 sm:$0xff]  }
  0xc6   :  { %1763 = vmatprep.subr.bf16.mxu0 %v2958_v38  ;;  %1927 = vmatprep.subr.bf16.mxu1 %v2961_v39  ;;  %v3045_v38 = vld [vmem:[#allocation5 + $0x64c] ss:$16 sps:$4 sm:$0xff]   ;;  %v3040_v39 = vld [vmem:[#allocation5 + $0x640] ss:$16 sps:$4 sm:$0xff]  }
  0xc9   :  { %1764 = vmatpush1.bf16.msra.mxu0 %v2956_v40  ;;  %1928 = vmatpush1.bf16.msra.mxu1 %v2959_v41  ;;  %v3043_v40 = vld [vmem:[#allocation5 + $0x648] ss:$16 sps:$4 sm:$0xff]   ;;  %v3051_v41 = vld [vmem:[#allocation5 + $0x66c] ss:$16 sps:$4 sm:$0xff]  }
  0xca   :  { %1765 = vmatprep.subr.bf16.mxu0 %v2964_v42  ;;  %1929 = vmatprep.subr.bf16.mxu1 %v2967_v44  ;;  %v3046_v42 = vld [vmem:[#allocation5 + $0x660] ss:$16 sps:$4 sm:$0xff]   ;;  %v3049_v44 = vld [vmem:[#allocation5 + $0x668] ss:$16 sps:$4 sm:$0xff]  }
  0xcd   :  { %1766 = vmatpush1.bf16.msra.mxu0 %v2962_v45  ;;  %1930 = vmatpush1.bf16.msra.mxu1 %v2965_v46  ;;  %v3054_v45 = vld [vmem:[#allocation5 + $0x684] ss:$16 sps:$4 sm:$0xff]   ;;  %v3057_v46 = vld [vmem:[#allocation5 + $0x68c] ss:$16 sps:$4 sm:$0xff]  }
  0xce   :  { %1767 = vmatprep.subr.bf16.mxu0 %v2970_v47  ;;  %1931 = vmatprep.subr.bf16.mxu1 %v2973_v48  ;;  %v3052_v47 = vld [vmem:[#allocation5 + $0x680] ss:$16 sps:$4 sm:$0xff]   ;;  %v3055_v48 = vld [vmem:[#allocation5 + $0x688] ss:$16 sps:$4 sm:$0xff]  }
  0xd1   :  { %1768 = vmatpush1.bf16.msra.mxu0 %v2968_v50  ;;  %1932 = vmatpush1.bf16.msra.mxu1 %v2971_v51  ;;  %v3060_v50 = vld [vmem:[#allocation5 + $0x6a4] ss:$16 sps:$4 sm:$0xff]   ;;  %v3063_v51 = vld [vmem:[#allocation5 + $0x6ac] ss:$16 sps:$4 sm:$0xff]  }
  0xd2   :  { %1769 = vmatprep.subr.bf16.mxu0 %v2976_v52  ;;  %1933 = vmatprep.subr.bf16.mxu1 %v2979_v53  ;;  %v3058_v52 = vld [vmem:[#allocation5 + $0x6a0] ss:$16 sps:$4 sm:$0xff]   ;;  %v3061_v53 = vld [vmem:[#allocation5 + $0x6a8] ss:$16 sps:$4 sm:$0xff]  }
  0xd5   :  { %1770 = vmatpush1.bf16.msra.mxu0 %v2974_v54  ;;  %1934 = vmatpush1.bf16.msra.mxu1 %v2977_v55  ;;  %v3066_v54 = vld [vmem:[#allocation5 + $0x6c4] ss:$16 sps:$4 sm:$0xff]   ;;  %v3069_v55 = vld [vmem:[#allocation5 + $0x6cc] ss:$16 sps:$4 sm:$0xff]  }
  0xd6   :  { %1771 = vmatprep.subr.bf16.mxu0 %v2982_v56  ;;  %1935 = vmatprep.subr.bf16.mxu1 %v2985_v57  ;;  %v3064_v56 = vld [vmem:[#allocation5 + $0x6c0] ss:$16 sps:$4 sm:$0xff]   ;;  %v3067_v57 = vld [vmem:[#allocation5 + $0x6c8] ss:$16 sps:$4 sm:$0xff]  }
  0xd9   :  { %1772 = vmatpush1.bf16.msra.mxu0 %v2980_v58  ;;  %1936 = vmatpush1.bf16.msra.mxu1 %v2983_v59  ;;  %v3072_v58 = vld [vmem:[#allocation5 + $0x6e4] ss:$16 sps:$4 sm:$0xff]   ;;  %v3075_v59 = vld [vmem:[#allocation5 + $0x6ec] ss:$16 sps:$4 sm:$0xff]  }
  0xda   :  { %1773 = vmatprep.subr.bf16.mxu0 %v2988_v60  ;;  %1937 = vmatprep.subr.bf16.mxu1 %v2991_v61  ;;  %v3070_v60 = vld [vmem:[#allocation5 + $0x6e0] ss:$16 sps:$4 sm:$0xff]   ;;  %v3073_v61 = vld [vmem:[#allocation5 + $0x6e8] ss:$16 sps:$4 sm:$0xff]  }
  0xdd   :  { %1774 = vmatpush1.bf16.msra.mxu0 %v2986_v62  ;;  %1938 = vmatpush1.bf16.msra.mxu1 %v2989_v63  ;;  %v3078_v62 = vld [vmem:[#allocation5 + $0x704] ss:$16 sps:$4 sm:$0xff]   ;;  %v3081_v63 = vld [vmem:[#allocation5 + $0x70c] ss:$16 sps:$4 sm:$0xff]  }
  0xde   :  { %1775 = vmatprep.subr.bf16.mxu0 %v2994_v0  ;;  %1939 = vmatprep.subr.bf16.mxu1 %v2997_v1  ;;  %v3076_v0 = vld [vmem:[#allocation5 + $0x700] ss:$16 sps:$4 sm:$0xff]   ;;  %v3079_v1 = vld [vmem:[#allocation5 + $0x708] ss:$16 sps:$4 sm:$0xff]  }
  0xe1   :  { %1776 = vmatpush1.bf16.msra.mxu0 %v2992_v2  ;;  %1940 = vmatpush1.bf16.msra.mxu1 %v2995_v3  ;;  %v3084_v2 = vld [vmem:[#allocation5 + $0x724] ss:$16 sps:$4 sm:$0xff]   ;;  %v3087_v3 = vld [vmem:[#allocation5 + $0x72c] ss:$16 sps:$4 sm:$0xff]  }
  0xe2   :  { %1777 = vmatprep.subr.bf16.mxu0 %v3000_v4  ;;  %1941 = vmatprep.subr.bf16.mxu1 %v3003_v5  ;;  %v3082_v4 = vld [vmem:[#allocation5 + $0x720] ss:$16 sps:$4 sm:$0xff]   ;;  %v3085_v5 = vld [vmem:[#allocation5 + $0x728] ss:$16 sps:$4 sm:$0xff]  }
  0xe5   :  { %1778 = vmatpush1.bf16.msra.mxu0 %v2998_v6  ;;  %1942 = vmatpush1.bf16.msra.mxu1 %v3001_v7  ;;  %v3090_v6 = vld [vmem:[#allocation5 + $0x744] ss:$16 sps:$4 sm:$0xff]   ;;  %v3093_v7 = vld [vmem:[#allocation5 + $0x74c] ss:$16 sps:$4 sm:$0xff]  }
  0xe6   :  { %1779 = vmatprep.subr.bf16.mxu0 %v3006_v8  ;;  %1943 = vmatprep.subr.bf16.mxu1 %v3009_v10  ;;  %v3088_v8 = vld [vmem:[#allocation5 + $0x740] ss:$16 sps:$4 sm:$0xff]   ;;  %v3091_v10 = vld [vmem:[#allocation5 + $0x748] ss:$16 sps:$4 sm:$0xff]  }
  0xe9   :  { %1780 = vmatpush1.bf16.msra.mxu0 %v3004_v11  ;;  %1944 = vmatpush1.bf16.msra.mxu1 %v3007_v12  ;;  %v3096_v11 = vld [vmem:[#allocation5 + $0x764] ss:$16 sps:$4 sm:$0xff]   ;;  %v3099_v12 = vld [vmem:[#allocation5 + $0x76c] ss:$16 sps:$4 sm:$0xff]  }
  0xea   :  { %1781 = vmatprep.subr.bf16.mxu0 %v3012_v13  ;;  %1945 = vmatprep.subr.bf16.mxu1 %v3015_v14  ;;  %v3094_v13 = vld [vmem:[#allocation5 + $0x760] ss:$16 sps:$4 sm:$0xff]   ;;  %v3097_v14 = vld [vmem:[#allocation5 + $0x768] ss:$16 sps:$4 sm:$0xff]  }
  0xed   :  { %1782 = vmatpush1.bf16.msra.mxu0 %v3010_v15  ;;  %1946 = vmatpush1.bf16.msra.mxu1 %v3013_v16  ;;  %v3102_v15 = vld [vmem:[#allocation5 + $0x784] ss:$16 sps:$4 sm:$0xff]   ;;  %v3105_v16 = vld [vmem:[#allocation5 + $0x78c] ss:$16 sps:$4 sm:$0xff]  }
  0xee   :  { %1783 = vmatprep.subr.bf16.mxu0 %v3018_v17  ;;  %1947 = vmatprep.subr.bf16.mxu1 %v3021_v18  ;;  %v3100_v17 = vld [vmem:[#allocation5 + $0x780] ss:$16 sps:$4 sm:$0xff]   ;;  %v3103_v18 = vld [vmem:[#allocation5 + $0x788] ss:$16 sps:$4 sm:$0xff]  }
  0xf1   :  { %1784 = vmatpush1.bf16.msra.mxu0 %v3016_v19  ;;  %1948 = vmatpush1.bf16.msra.mxu1 %v3019_v21  ;;  %v3108_v19 = vld [vmem:[#allocation5 + $0x7a4] ss:$16 sps:$4 sm:$0xff]   ;;  %v3106_v21 = vld [vmem:[#allocation5 + $0x7a0] ss:$16 sps:$4 sm:$0xff]  }
  0xf2   :  { %1785 = vmatprep.subr.bf16.mxu0 %v3024_v22  ;;  %1949 = vmatprep.subr.bf16.mxu1 %v3027_v24  ;;  %v3109_v22 = vld [vmem:[#allocation5 + $0x7a8] ss:$16 sps:$4 sm:$0xff]   ;;  %v3114_v24 = vld [vmem:[#allocation5 + $0x7c4] ss:$16 sps:$4 sm:$0xff]  }
  0xf5   :  { %1786 = vmatpush1.bf16.msra.mxu0 %v3022_v25  ;;  %1950 = vmatpush1.bf16.msra.mxu1 %v3025_v9  ;;  %v3117_v25 = vld [vmem:[#allocation5 + $0x7cc] ss:$16 sps:$4 sm:$0xff]   ;;  %v3112_v9 = vld [vmem:[#allocation5 + $0x7c0] ss:$16 sps:$4 sm:$0xff]  }
  0xf6   :  { %1796 = vmatprep.subr.bf16.mxu0 %v3030_v28  ;;  %1960 = vmatprep.subr.bf16.mxu1 %v3033_v29  ;;  %v3115_v28 = vld [vmem:[#allocation5 + $0x7c8] ss:$16 sps:$4 sm:$0xff]   ;;  %v3120_v29 = vld [vmem:[#allocation5 + $0x7e4] ss:$16 sps:$4 sm:$0xff]  }
  0xf8   :  { %1788 = vmatmul.mubr.bf16.vlgmr.msra.gmra.mrb[0].mxu0 %v111_v32  ;;  %1952 = vmatmul.mubr.bf16.vlgmr.msra.gmra.mrb[0].mxu1 %v111_v32  ;;  %v3125_v32 = vld [vmem:[#allocation7 + $0x40] sm:$0xff]  }
  0xf9   :  { %1797 = vmatpush1.bf16.msra.mxu0 %v3028_v30  ;;  %1961 = vmatpush1.bf16.msra.mxu1 %v3031_v31  ;;  %v3123_v30 = vld [vmem:[#allocation5 + $0x7ec] ss:$16 sps:$4 sm:$0xff]   ;;  %v3121_v31 = vld [vmem:[#allocation5 + $0x7e8] ss:$16 sps:$4 sm:$0xff]  }
  0xfa   :  { %1798 = vmatprep.subr.bf16.mxu0 %v3036_v33  ;;  %1962 = vmatprep.subr.bf16.mxu1 %v3039_v49  ;;  %v3126_v33 = vld [vmem:[#allocation7 + $0xc0] sm:$0xff]   ;;  %v113_v49 = vpack.c.bf16 %v3350_v27, %v3350_v27  ;;  %v3135_v27 = vld [vmem:[#allocation7 + $0x10] sm:$0xff]  }
  0xfb   :  { %1828 = vmatprep.mubr.bf16.mxu0 %v114_v36  ;;  %1992 = vmatprep.mubr.bf16.mxu1 %v114_v36  ;;  %v3129_v36 = vld [vmem:[#allocation7 + $0x48] sm:$0xff]  }
  0xfd   :  { %1799 = vmatpush1.bf16.msra.mxu0 %v3034_v34  ;;  %1963 = vmatpush1.bf16.msra.mxu1 %v3037_v35  ;;  %v3127_v34 = vld [vmem:[#allocation7] sm:$0xff]  }
  0xfe   :  { %1800 = vmatprep.subr.bf16.mxu0 %v3042_v37  ;;  %1964 = vmatprep.subr.bf16.mxu1 %v3045_v38  ;;  %v3128_v35 = vld [vmem:[#allocation7 + $0x80] sm:$0xff]   ;;  %v3130_v37 = vld [vmem:[#allocation7 + $0xc8] sm:$0xff]  }
  0xff   :  { %v3131_v38 = vld [vmem:[#allocation7 + $0x8] sm:$0xff]  }
 0x101   :  { %1801 = vmatpush1.bf16.msra.mxu0 %v3040_v39  ;;  %1965 = vmatpush1.bf16.msra.mxu1 %v3043_v40  ;;  %v3132_v39 = vld [vmem:[#allocation7 + $0x88] sm:$0xff]   ;;  %v3133_v40 = vld [vmem:[#allocation7 + $0x50] sm:$0xff]  }
 0x102   :  { %1802 = vmatprep.subr.bf16.mxu0 %v3048_v26  ;;  %1966 = vmatprep.subr.bf16.mxu1 %v3051_v41  ;;  %v3134_v26 = vld [vmem:[#allocation7 + $0xd0] sm:$0xff]  }
 0x103   :  { %v3136_v41 = vld [vmem:[#allocation7 + $0x90] sm:$0xff]  }
 0x105   :  { %1803 = vmatpush1.bf16.msra.mxu0 %v3046_v42  ;;  %1967 = vmatpush1.bf16.msra.mxu1 %v3049_v44  ;;  %v3137_v42 = vld [vmem:[#allocation7 + $0x58] sm:$0xff]  }
 0x106   :  { %1804 = vmatprep.subr.bf16.mxu0 %v3054_v45  ;;  %1968 = vmatprep.subr.bf16.mxu1 %v3057_v46  ;;  %v3138_v44 = vld [vmem:[#allocation7 + $0xd8] sm:$0xff]  }
 0x107   :  { %v3139_v45 = vld [vmem:[#allocation7 + $0x18] sm:$0xff]  }
 0x108   :  { %v3140_v46 = vld [vmem:[#allocation7 + $0x98] sm:$0xff]  }
 0x109   :  { %1805 = vmatpush1.bf16.msra.mxu0 %v3052_v47  ;;  %1969 = vmatpush1.bf16.msra.mxu1 %v3055_v48  ;;  %v3141_v47 = vld [vmem:[#allocation7 + $0x60] sm:$0xff]  }
 0x10a   :  { %1806 = vmatprep.subr.bf16.mxu0 %v3060_v50  ;;  %1970 = vmatprep.subr.bf16.mxu1 %v3063_v51  ;;  %v3142_v48 = vld [vmem:[#allocation7 + $0xe0] sm:$0xff]  }
 0x10b   :  { %v3143_v50 = vld [vmem:[#allocation7 + $0x20] sm:$0xff]  }
 0x10c   :  { %v3144_v51 = vld [vmem:[#allocation7 + $0xa0] sm:$0xff]  }
 0x10d   :  { %1807 = vmatpush1.bf16.msra.mxu0 %v3058_v52  ;;  %1971 = vmatpush1.bf16.msra.mxu1 %v3061_v53  ;;  %v3145_v52 = vld [vmem:[#allocation7 + $0x68] sm:$0xff]  }
 0x10e   :  { %1808 = vmatprep.subr.bf16.mxu0 %v3066_v54  ;;  %1972 = vmatprep.subr.bf16.mxu1 %v3069_v55  ;;  %v3146_v53 = vld [vmem:[#allocation7 + $0xe8] sm:$0xff]  }
 0x10f   :  { %v3147_v54 = vld [vmem:[#allocation7 + $0x28] sm:$0xff]  }
 0x110   :  { %v3148_v55 = vld [vmem:[#allocation7 + $0xa8] sm:$0xff]  }
 0x111   :  { %1809 = vmatpush1.bf16.msra.mxu0 %v3064_v56  ;;  %1973 = vmatpush1.bf16.msra.mxu1 %v3067_v57  ;;  %v3149_v56 = vld [vmem:[#allocation7 + $0x70] sm:$0xff]  }
 0x112   :  { %1810 = vmatprep.subr.bf16.mxu0 %v3072_v58  ;;  %1974 = vmatprep.subr.bf16.mxu1 %v3075_v59  ;;  %v3150_v57 = vld [vmem:[#allocation7 + $0xf0] sm:$0xff]  }
 0x113   :  { %v3151_v58 = vld [vmem:[#allocation7 + $0x30] sm:$0xff]  }
 0x114   :  { %v3152_v59 = vld [vmem:[#allocation7 + $0xb0] sm:$0xff]  }
 0x115   :  { %1811 = vmatpush1.bf16.msra.mxu0 %v3070_v60  ;;  %1975 = vmatpush1.bf16.msra.mxu1 %v3073_v61  ;;  %v3153_v60 = vld [vmem:[#allocation7 + $0x78] sm:$0xff]  }
 0x116   :  { %1812 = vmatprep.subr.bf16.mxu0 %v3078_v62  ;;  %1976 = vmatprep.subr.bf16.mxu1 %v3081_v63  ;;  %v3154_v61 = vld [vmem:[#allocation7 + $0xf8] sm:$0xff]  }
 0x117   :  { %v3155_v62 = vld [vmem:[#allocation7 + $0x38] sm:$0xff]  }
 0x118   :  { %v3156_v63 = vld [vmem:[#allocation7 + $0xb8] sm:$0xff]  }
 0x119   :  { %1813 = vmatpush1.bf16.msra.mxu0 %v3076_v0  ;;  %1977 = vmatpush1.bf16.msra.mxu1 %v3079_v1  ;;  %v375_v0 = vsub.s32 0, %v3326_v43  ;;  %v383_v1 = vsub.s32 2, %v3326_v43 }
 0x11a   :  { %1814 = vmatprep.subr.bf16.mxu0 %v3084_v2  ;;  %1978 = vmatprep.subr.bf16.mxu1 %v3087_v3  ;;  %v371_v2 = vld [vmem:[%s3382_s2] sm:$0xf]  ;;  %v379_v3 = vsub.s32 1, %v3326_v43 }
 0x11d   :  { %1815 = vmatpush1.bf16.msra.mxu0 %v3082_v4  ;;  %1979 = vmatpush1.bf16.msra.mxu1 %v3085_v5  ;;  %v387_v4 = vsub.s32 3, %v3326_v43  ;;  %v376_v5 = vrot.slane %v371_v2, %v375_v0 }
 0x11e   :  { %1816 = vmatprep.subr.bf16.mxu0 %v3090_v6  ;;  %1980 = vmatprep.subr.bf16.mxu1 %v3093_v7  ;;  %v384_v6 = vrot.slane %v371_v2, %v383_v1  ;;  %v380_v7 = vrot.slane %v371_v2, %v379_v3 }
 0x121   :  { %1817 = vmatpush1.bf16.msra.mxu0 %v3088_v8  ;;  %1981 = vmatpush1.bf16.msra.mxu1 %v3091_v10  ;;  %v388_v8 = vrot.slane %v371_v2, %v387_v4 }
 0x122   :  { %1818 = vmatprep.subr.bf16.mxu0 %v3096_v11  ;;  %1982 = vmatprep.subr.bf16.mxu1 %v3099_v12 }
 0x125   :  { %1819 = vmatpush1.bf16.msra.mxu0 %v3094_v13  ;;  %1983 = vmatpush1.bf16.msra.mxu1 %v3097_v14 }
 0x126   :  { %1820 = vmatprep.subr.bf16.mxu0 %v3102_v15  ;;  %1984 = vmatprep.subr.bf16.mxu1 %v3105_v16 }
 0x129   :  { %1821 = vmatpush1.bf16.msra.mxu0 %v3100_v17  ;;  %1985 = vmatpush1.bf16.msra.mxu1 %v3103_v18 }
 0x12a   :  { %1822 = vmatprep.subr.bf16.mxu0 %v3108_v19  ;;  %1986 = vmatprep.subr.bf16.mxu1 %v3111_v20 }
 0x12d   :  { %1823 = vmatpush1.bf16.msra.mxu0 %v3106_v21  ;;  %1987 = vmatpush1.bf16.msra.mxu1 %v3109_v22 }
 0x12e   :  { %1824 = vmatprep.subr.bf16.mxu0 %v3114_v24  ;;  %1988 = vmatprep.subr.bf16.mxu1 %v3117_v25 }
 0x131   :  { %1825 = vmatpush1.bf16.msra.mxu0 %v3112_v9  ;;  %1989 = vmatpush1.bf16.msra.mxu1 %v3115_v28 }
 0x132   :  { %1826 = vmatprep.subr.bf16.mxu0 %v3120_v29  ;;  %1990 = vmatprep.subr.bf16.mxu1 %v3123_v30 }
 0x135   :  { %1827 = vmatpush1.bf16.msra.mxu0 %v3118_v23  ;;  %1991 = vmatpush1.bf16.msra.mxu1 %v3121_v31 }
 0x136   :  { %2658 = vmatprep.subr.bf16.mxu0 %v3125_v32  ;;  %2680 = vmatprep.subr.bf16.mxu1 %v3126_v33  ;;  %v2625_v32 = vld [vmem:[%s3384_s4] ss:$0 sm:$0xff] }
 0x138   :  { %1829 = vmatmul.mubr.bf16.vlgmr.msra.gmra.mrb[0].mxu0 %v113_v49  ;;  %1993 = vmatmul.mubr.bf16.vlgmr.msra.gmra.mrb[0].mxu1 %v113_v49 }
 0x139   :  { %2659 = vmatpush3.bf16.msra.mxu0 %v3127_v34  ;;  %2681 = vmatpush3.bf16.msra.mxu1 %v3128_v35 }
 0x13a   :  { %2660 = vmatprep.subr.bf16.mxu0 %v3129_v36  ;;  %2682 = vmatprep.subr.bf16.mxu1 %v3130_v37 }
 0x13d   :  { %2661 = vmatpush3.bf16.msra.mxu0 %v3131_v38  ;;  %2683 = vmatpush3.bf16.msra.mxu1 %v3132_v39 }
 0x13e   :  { %2662 = vmatprep.subr.bf16.mxu0 %v3133_v40  ;;  %2684 = vmatprep.subr.bf16.mxu1 %v3134_v26 }
 0x141   :  { %2663 = vmatpush3.bf16.msra.mxu0 %v3135_v27  ;;  %2685 = vmatpush3.bf16.msra.mxu1 %v3136_v41 }
 0x142   :  { %2664 = vmatprep.subr.bf16.mxu0 %v3137_v42  ;;  %2686 = vmatprep.subr.bf16.mxu1 %v3138_v44 }
 0x145   :  { %2665 = vmatpush3.bf16.msra.mxu0 %v3139_v45  ;;  %2687 = vmatpush3.bf16.msra.mxu1 %v3140_v46 }
 0x146   :  { %2666 = vmatprep.subr.bf16.mxu0 %v3141_v47  ;;  %2688 = vmatprep.subr.bf16.mxu1 %v3142_v48 }
 0x149   :  { %2667 = vmatpush3.bf16.msra.mxu0 %v3143_v50  ;;  %2689 = vmatpush3.bf16.msra.mxu1 %v3144_v51 }
 0x14a   :  { %2668 = vmatprep.subr.bf16.mxu0 %v3145_v52  ;;  %2690 = vmatprep.subr.bf16.mxu1 %v3146_v53 }
 0x14d   :  { %2669 = vmatpush3.bf16.msra.mxu0 %v3147_v54  ;;  %2691 = vmatpush3.bf16.msra.mxu1 %v3148_v55 }
 0x14e   :  { %2670 = vmatprep.subr.bf16.mxu0 %v3149_v56  ;;  %2692 = vmatprep.subr.bf16.mxu1 %v3150_v57 }
 0x151   :  { %2671 = vmatpush3.bf16.msra.mxu0 %v3151_v58  ;;  %2693 = vmatpush3.bf16.msra.mxu1 %v3152_v59 }
 0x152   :  { %2672 = vmatprep.subr.bf16.mxu0 %v3153_v60  ;;  %2694 = vmatprep.subr.bf16.mxu1 %v3154_v61 }
 0x155   :  { %2673 = vmatpush3.bf16.msra.mxu0 %v3155_v62  ;;  %2695 = vmatpush3.bf16.msra.mxu1 %v3156_v63 }
 0x20b   :  { %v1830_v10 = vpop.f32.mrb[0].mxu0  ;;  %v1994_v11 = vpop.f32.mrb[0].mxu1 }
 0x20c   :  { %v2702_v12 = vadd.f32 %v1830_v10, %v376_v5  ;;  %v2704_v13 = vadd.f32 %v1994_v11, %v384_v6  ;;  %v1832_v14 = vpop.f32.mrb[1].mxu0  ;;  %v1996_v15 = vpop.f32.mrb[1].mxu1 }
 0x20d   :  { %v2703_v16 = vadd.f32 %v1832_v14, %v380_v7  ;;  %v2705_v17 = vadd.f32 %v1996_v15, %v388_v8  ;;  %v1834_v18 = vpop.f32.mrb[2].mxu0  ;;  %v1998_v19 = vpop.f32.mrb[2].mxu1 }
 0x20e   :  { %v2001_v20 = vmax.f32 %v2702_v12, 0.0  ;;  %v2003_v21 = vmax.f32 %v2704_v13, 0.0  ;;  %v1835_v22 = vpop.f32.mrb[3].mxu0  ;;  %v1999_v24 = vpop.f32.mrb[3].mxu1 }
 0x20f   :  { %v2002_v25 = vmax.f32 %v2703_v16, 0.0  ;;  %v2004_v43 = vmax.f32 %v2705_v17, 0.0 }
 0x210   :  { %v2005_v29 = vpack.c.bf16 %v2001_v20, %v2001_v20  ;;  %v2007_v30 = vpack.c.bf16 %v2003_v21, %v2003_v21 }
 0x211   :  { %v2006_v9 = vpack.c.bf16 %v2002_v25, %v2002_v25  ;;  %v2008_v28 = vpack.c.bf16 %v2004_v43, %v2004_v43 }
 0x213   :  { %2304 = vmatprep.mubr.bf16.mxu0 %v2006_v9  ;;  %2344 = vmatprep.mubr.bf16.mxu1 %v2008_v28 }
 0x214   :  { %2305 = vmatmul.mubr.bf16.vlgmr.msra.gmra.mrb[4].mxu0 %v2005_v29  ;;  %2345 = vmatmul.mubr.bf16.vlgmr.msra.gmra.mrb[4].mxu1 %v2007_v30 }
 0x2e7   :  { %v2674_v23 = vpop.f32.mrb[4].mxu0  ;;  %v2696_v31 = vpop.f32.mrb[4].mxu1 }
 0x2e8   :  { %v2675_v33 = vpop.f32.mrb[5].mxu0  ;;  %v2697_v49 = vpop.f32.mrb[5].mxu1 }
 0x2e9   :  { %v2676_v34 = vadd.f32 %v2675_v33, %v2674_v23  ;;  %v2698_v35 = vadd.f32 %v2697_v49, %v2696_v31  ;;  %v2677_v36 = vpop.f32.mrb[6].mxu0  ;;  %v2699_v37 = vpop.f32.mrb[6].mxu1 }
 0x2ea   :  { %v2678_v38 = vpop.f32.mrb[7].mxu0  ;;  %v2700_v39 = vpop.f32.mrb[7].mxu1 }
 0x2eb   :  { %v2307_v40 = vadd.f32 %v2676_v34, %v2625_v32 }
 0x2ed   :  { %v2347_v26 = vadd.f32 %v2698_v35, %v2307_v40 }
 0x2ef   :  { %2352 = vst [vmem:[#allocation8] sm:$0x3] %v2347_v26 }
 0x2f0   :  { %3234 = shalt.err (!%p3231_p0)
}
 0x2f1   :  { %s3235_s12 = scalar_lea.hbm %s3385_s5, 32 }
 0x2f2   :  { %p3236_p1 = scmp.ne.s32.totalorder %s3385_s5, %s3235_s12  ;;  %p3239_p2 = scmp.lt.u32.totalorder %s3235_s12, %s3385_s5 }
 0x2f4   :  { %p3241_p3 = pnand %p3239_p2, %p3236_p1 }
 0x2f6   :  { %3244 = shalt.err (!%p3241_p3)
}
 0x2f7   :  { %2362 = dma.vmem_to_hbm [thread:$0]  %s2360_s9, 32, %s3385_s5, [#allocation4]  }
 0x2f8   :  { %3249 = dma.done.wait [#allocation4], 32  }
 0x2f9   :  { %3250 = vsyncadd [#allocation4], 4294967264 }
 0x2fa   :  { %2366 = vsyncpa [#allocation3], 1 }
 0x2fb   :  { %2367 = vsyncpa [#allocation6], 1 }
 0x2fc   :  { %2368 = vsyncpa [#allocation4], 1 }

</bundles_post_ra>
